<compile_context>
chip_gen: v5e
topology: v5e:2x2
jax: 0.10.0
libtpu: 0.0.40
codegen_flags: <defaults>
</compile_context>

<pallas_src>
import jax
import jax.numpy as jnp
from jax.experimental import pallas as pl
from jax.experimental.pallas import tpu as pltpu

_KERNELS = {
    "linear": [1 / 8, 3 / 8, 3 / 8, 1 / 8],
    "cubic": [-0.01171875, -0.03515625, 0.11328125, 0.43359375,
              0.43359375, 0.11328125, -0.03515625, -0.01171875],
    "lanczos3": [0.003689131001010537, 0.015056144446134567, -0.03399861603975296,
                 -0.066637322306633, 0.13550527393817902, 0.44638532400131226,
                 0.44638532400131226, 0.13550527393817902, -0.066637322306633,
                 -0.03399861603975296, 0.015056144446134567, 0.003689131001010537],
}


def _round_up(n, m):
    return -(-n // m) * m


def _vmem_limit(*block_nbytes):
    """Raise the scoped-VMEM limit only when the blocks actually need it.

    Accounts for double-buffering + slack; capped at 64 MiB (v7x physical VMEM
    per TC).  At small shapes this returns None (use the compiler default).
    """
    need = 2 * sum(int(b) for b in block_nbytes) + (2 << 20)
    return min(need, 64 << 20) if need > (16 << 20) else None


# ----------------------------------------------------------------------------
# Learnable branch: nn.Conv1d(C, C, kernel_size=3, stride=2, padding=1,
#                             padding_mode='reflect')
# ----------------------------------------------------------------------------
def _conv1d_k3_s2_reflect(x, weight, bias):
    B, Cin, L = x.shape
    Cout = weight.shape[0]
    assert weight.shape == (Cout, Cin, 3)
    assert L >= 2, "reflect padding of 1 requires L >= 2"

    xp = jnp.pad(x, ((0, 0), (0, 0), (1, 1)), mode="reflect")
    Lp = L + 2
    Lout = (Lp - 3) // 2 + 1

    # Even/odd phase split of the padded signal:
    #   xp[2l + k] == xe[l + k//2] (k even)  /  xo[l + k//2] (k odd)
    xe = xp[..., 0::2]                       # (B, Cin, Le)
    xo = xp[..., 1::2]                       # (B, Cin, Lo)
    Le, Lo = xe.shape[-1], xo.shape[-1]
    assert Le >= Lout + 1 and Lo >= Lout

    w_k = jnp.transpose(weight, (2, 0, 1)).astype(jnp.float32)   # (3, Cout, Cin)
    b2 = bias.reshape(Cout, 1).astype(jnp.float32)

    def kernel(xe_ref, xo_ref, w_ref, b_ref, o_ref):
        xe_t = xe_ref[0]                      # (Cin, Le)
        xo_t = xo_ref[0]                      # (Cin, Lo)
        # One MXU matmul per tap; output is (Cout, Lout) -> lane-dense Lout,
        # f32 accumulation via preferred_element_type.
        acc = jnp.dot(w_ref[0], xe_t[:, 0:Lout],
                      preferred_element_type=jnp.float32)
        acc = acc + jnp.dot(w_ref[1], xo_t[:, 0:Lout],
                            preferred_element_type=jnp.float32)
        acc = acc + jnp.dot(w_ref[2], xe_t[:, 1:Lout + 1],
                            preferred_element_type=jnp.float32)
        o_ref[0] = (acc + b_ref[...]).astype(o_ref.dtype)

    esz = jnp.dtype(x.dtype).itemsize
    vmem = _vmem_limit(Cin * Le * esz, Cin * Lo * esz,
                       Cout * Lout * esz, 4 * Cout * Lout)

    # TODO(synk): for very long sequences where a full (C, Lout) block per
    # batch no longer fits VMEM, also tile Lout (needs a 1-element even-phase
    # halo per tile).
    return pl.pallas_call(
        kernel,
        out_shape=jax.ShapeDtypeStruct((B, Cout, Lout), x.dtype),
        grid=(B,),
        in_specs=[
            pl.BlockSpec((1, Cin, Le), lambda b: (b, 0, 0)),
            pl.BlockSpec((1, Cin, Lo), lambda b: (b, 0, 0)),
            pl.BlockSpec((3, Cout, Cin), lambda b: (0, 0, 0)),
            pl.BlockSpec((Cout, 1), lambda b: (0, 0)),
        ],
        out_specs=pl.BlockSpec((1, Cout, Lout), lambda b: (b, 0, 0)),
        compiler_params=pltpu.CompilerParams(
            dimension_semantics=("parallel",),
            vmem_limit_bytes=vmem),
    )(xe, xo, w_k, b2)


# ----------------------------------------------------------------------------
# Non-learnable branch: fixed anti-aliasing taps applied depthwise, stride 2.
# ----------------------------------------------------------------------------
def _downsample_fixed_depthwise(x, taps):
    B, C, L = x.shape
    K = len(taps)
    pad = K // 2 - 1
    half = K // 2
    assert L > pad, "reflect padding requires pad < length"

    xp = jnp.pad(x, ((0, 0), (0, 0), (pad, pad)), mode="reflect")
    Lp = L + 2 * pad
    Lout = (Lp - K) // 2 + 1

    xe = xp[..., 0::2]
    xo = xp[..., 1::2]
    Le, Lo = xe.shape[-1], xo.shape[-1]
    assert Le >= Lout + half - 1 and Lo >= Lout + half - 1

    # Depthwise => every (batch, channel) row is independent: flatten to rows
    # and tile the row axis; Lout stays on the lane axis (lane-dense output).
    R = B * C
    xe = xe.reshape(R, Le)
    xo = xo.reshape(R, Lo)

    r_tile = min(256, _round_up(R, 8))
    r_pad = _round_up(R, r_tile)
    if r_pad != R:
        xe = jnp.pad(xe, ((0, r_pad - R), (0, 0)))
        xo = jnp.pad(xo, ((0, r_pad - R), (0, 0)))

    taps_f = tuple(float(t) for t in taps)    # exact f32 taps, f32 accumulation

    def kernel(xe_ref, xo_ref, o_ref):
        acc = jnp.zeros((r_tile, Lout), jnp.float32)
        for j in range(half):                 # K shifted VPU multiply-accumulates
            acc = acc + taps_f[2 * j] * xe_ref[:, j:j + Lout].astype(jnp.float32)
            acc = acc + taps_f[2 * j + 1] * xo_ref[:, j:j + Lout].astype(jnp.float32)
        o_ref[...] = acc.astype(o_ref.dtype)

    esz = jnp.dtype(x.dtype).itemsize
    vmem = _vmem_limit(r_tile * Le * esz, r_tile * Lo * esz,
                       r_tile * Lout * esz, 4 * r_tile * Lout)

    out = pl.pallas_call(
        kernel,
        out_shape=jax.ShapeDtypeStruct((r_pad, Lout), x.dtype),
        grid=(r_pad // r_tile,),
        in_specs=[
            pl.BlockSpec((r_tile, Le), lambda r: (r, 0)),
            pl.BlockSpec((r_tile, Lo), lambda r: (r, 0)),
        ],
        out_specs=pl.BlockSpec((r_tile, Lout), lambda r: (r, 0)),
        compiler_params=pltpu.CompilerParams(
            dimension_semantics=("parallel",),
            vmem_limit_bytes=vmem),
    )(xe, xo)
    return out[:R].reshape(B, C, Lout)


# ----------------------------------------------------------------------------
# Module wrapper
# ----------------------------------------------------------------------------
class Downsample1d:
    """JAX/Pallas port of the PyTorch Downsample1d module (forward only)."""

    def __init__(self, key, kernel="linear", pad_mode="reflect",
                 learnable=True, num_channels=256):
        assert pad_mode == "reflect"  # TODO(synk): other torch pad modes not implemented
        self.kernel_1d = tuple(float(v) for v in _KERNELS[kernel])
        self.pad = len(self.kernel_1d) // 2 - 1
        self.learnable = learnable
        self.num_channels = num_channels
        if learnable:
            # deterministic init mimicking nn.Conv1d default (uniform +- 1/sqrt(fan_in))
            wkey, bkey = jax.random.split(key)
            fan_in = num_channels * 3
            bound = 1.0 / (fan_in ** 0.5)
            self.conv_w = jax.random.uniform(
                wkey, (num_channels, num_channels, 3),
                minval=-bound, maxval=bound, dtype=jnp.float32)
            self.conv_b = jax.random.uniform(
                bkey, (num_channels,),
                minval=-bound, maxval=bound, dtype=jnp.float32)
        else:
            self.conv_w = None
            self.conv_b = None

    def __call__(self, hidden_states):
        if self.learnable:
            return _conv1d_k3_s2_reflect(hidden_states, self.conv_w, self.conv_b)
        return _downsample_fixed_depthwise(hidden_states, self.kernel_1d)


# ----------------------------------------------------------------------------
# References (plain XLA) for correctness checks
# ----------------------------------------------------------------------------
def _reference_learnable(x, w, b):
    xp = jnp.pad(x, ((0, 0), (0, 0), (1, 1)), mode="reflect")
    out = jax.lax.conv_general_dilated(
        xp, w, window_strides=(2,), padding="VALID",
        dimension_numbers=("NCH", "OIH", "NCH"))
    return out + b[None, :, None]


def _reference_fixed(x, taps):
    C = x.shape[1]
    K = len(taps)
    pad = K // 2 - 1
    k = jnp.asarray(taps, jnp.float32)
    w = jnp.zeros((C, C, K), jnp.float32).at[jnp.arange(C), jnp.arange(C)].set(
        jnp.broadcast_to(k, (C, K)))
    xp = jnp.pad(x, ((0, 0), (0, 0), (pad, pad)), mode="reflect")
    return jax.lax.conv_general_dilated(
        xp, w, window_strides=(2,), padding="VALID",
        dimension_numbers=("NCH", "OIH", "NCH"))


if __name__ == "__main__":
    key = jax.random.PRNGKey(0)
    pkey, xkey = jax.random.split(key)

    B, C, L = 2, 8, 16
    x = jax.random.normal(xkey, (B, C, L), dtype=jnp.float32)

    # learnable branch (default forward path)
    ds_learn = Downsample1d(pkey, kernel="linear", learnable=True, num_channels=C)
    y_learn = jax.block_until_ready(ds_learn(x))
    ref_learn = _reference_learnable(x, ds_learn.conv_w, ds_learn.conv_b)
    assert y_learn.shape == (B, C, L // 2)
    assert jnp.allclose(y_learn, ref_learn, atol=2e-5, rtol=2e-5)

    # non-learnable branch (fixed anti-aliasing taps), small and larger K
    for kname in ("linear", "lanczos3"):
        ds_fixed = Downsample1d(pkey, kernel=kname, learnable=False, num_channels=C)
        y_fixed = jax.block_until_ready(ds_fixed(x))
        ref_fixed = _reference_fixed(x, _KERNELS[kname])
        assert y_fixed.shape == ref_fixed.shape
        assert jnp.allclose(y_fixed, ref_fixed, atol=2e-5, rtol=2e-5)

    print("KERNEL_OK")
</pallas_src>

<mosaic_0001>
module attributes {stable_mosaic.version = 11 : i64} {
  func.func @kernel(%arg0: i32, %arg1: memref<1x8x9xf32, #tpu.memory_space<vmem>>, %arg2: memref<1x8x9xf32, #tpu.memory_space<vmem>>, %arg3: memref<3x8x8xf32, #tpu.memory_space<vmem>>, %arg4: memref<8x1xf32, #tpu.memory_space<vmem>>, %arg5: memref<1x8x8xf32, #tpu.memory_space<vmem>>) attributes {dimension_semantics = [#tpu.dimension_semantics<parallel>], iteration_bounds = array<i64: 2>, scalar_prefetch = 0 : i64, scratch_operands = 0 : i64, tpu.core_type = #tpu.core_type<tc>, window_params = [{transform_indices = @transform_0, window_bounds = array<i64: 1, 8, 9>}, {transform_indices = @transform_1, window_bounds = array<i64: 1, 8, 9>}, {pipeline_mode = #tpu.pipeline_mode<synchronous>, transform_indices = @transform_2, window_bounds = array<i64: 3, 8, 8>}, {pipeline_mode = #tpu.pipeline_mode<synchronous>, transform_indices = @transform_3, window_bounds = array<i64: 8, 1>}, {transform_indices = @transform_4, window_bounds = array<i64: 1, 8, 8>}]} {
    %c0 = arith.constant 0 : index
    %c0_0 = arith.constant 0 : index
    %c0_1 = arith.constant 0 : index
    %0 = vector.load %arg1[%c0, %c0_0, %c0_1] : memref<1x8x9xf32, #tpu.memory_space<vmem>>, vector<1x8x9xf32>
    %1 = vector.shape_cast %0 : vector<1x8x9xf32> to vector<8x9xf32>
    %c0_2 = arith.constant 0 : index
    %c0_3 = arith.constant 0 : index
    %c0_4 = arith.constant 0 : index
    %2 = vector.load %arg2[%c0_2, %c0_3, %c0_4] : memref<1x8x9xf32, #tpu.memory_space<vmem>>, vector<1x8x9xf32>
    %3 = vector.shape_cast %2 : vector<1x8x9xf32> to vector<8x9xf32>
    %c0_5 = arith.constant 0 : index
    %c0_6 = arith.constant 0 : index
    %c0_7 = arith.constant 0 : index
    %4 = vector.load %arg3[%c0_5, %c0_6, %c0_7] : memref<3x8x8xf32, #tpu.memory_space<vmem>>, vector<1x8x8xf32>
    %5 = vector.shape_cast %4 : vector<1x8x8xf32> to vector<8x8xf32>
    %6 = vector.extract_strided_slice %1 {offsets = [0, 0], sizes = [8, 8], strides = [1, 1]} : vector<8x9xf32> to vector<8x8xf32>
    %cst = arith.constant dense<0.000000e+00> : vector<8x8xf32>
    %7 = tpu.matmul %5, %6, %cst {dimension_numbers = #tpu.dot_dimension_numbers<[1], [0], [0], [1], [0, 0, 1, 1], [], []>} : vector<8x8xf32>, vector<8x8xf32>, vector<8x8xf32> -> vector<8x8xf32>
    %c1 = arith.constant 1 : index
    %c0_8 = arith.constant 0 : index
    %c0_9 = arith.constant 0 : index
    %8 = vector.load %arg3[%c1, %c0_8, %c0_9] : memref<3x8x8xf32, #tpu.memory_space<vmem>>, vector<1x8x8xf32>
    %9 = vector.shape_cast %8 : vector<1x8x8xf32> to vector<8x8xf32>
    %10 = vector.extract_strided_slice %3 {offsets = [0, 0], sizes = [8, 8], strides = [1, 1]} : vector<8x9xf32> to vector<8x8xf32>
    %cst_10 = arith.constant dense<0.000000e+00> : vector<8x8xf32>
    %11 = tpu.matmul %9, %10, %cst_10 {dimension_numbers = #tpu.dot_dimension_numbers<[1], [0], [0], [1], [0, 0, 1, 1], [], []>} : vector<8x8xf32>, vector<8x8xf32>, vector<8x8xf32> -> vector<8x8xf32>
    %12 = arith.addf %7, %11 : vector<8x8xf32>
    %c2 = arith.constant 2 : index
    %c0_11 = arith.constant 0 : index
    %c0_12 = arith.constant 0 : index
    %13 = vector.load %arg3[%c2, %c0_11, %c0_12] : memref<3x8x8xf32, #tpu.memory_space<vmem>>, vector<1x8x8xf32>
    %14 = vector.shape_cast %13 : vector<1x8x8xf32> to vector<8x8xf32>
    %15 = vector.extract_strided_slice %1 {offsets = [0, 1], sizes = [8, 8], strides = [1, 1]} : vector<8x9xf32> to vector<8x8xf32>
    %cst_13 = arith.constant dense<0.000000e+00> : vector<8x8xf32>
    %16 = tpu.matmul %14, %15, %cst_13 {dimension_numbers = #tpu.dot_dimension_numbers<[1], [0], [0], [1], [0, 0, 1, 1], [], []>} : vector<8x8xf32>, vector<8x8xf32>, vector<8x8xf32> -> vector<8x8xf32>
    %17 = arith.addf %12, %16 : vector<8x8xf32>
    %c0_14 = arith.constant 0 : index
    %c0_15 = arith.constant 0 : index
    %18 = vector.load %arg4[%c0_14, %c0_15] : memref<8x1xf32, #tpu.memory_space<vmem>>, vector<8x1xf32>
    %19 = vector.broadcast %18 : vector<8x1xf32> to vector<8x8xf32>
    %20 = arith.addf %17, %19 : vector<8x8xf32>
    %c0_16 = arith.constant 0 : index
    %c0_17 = arith.constant 0 : index
    %c0_18 = arith.constant 0 : index
    %21 = vector.load %arg5[%c0_16, %c0_17, %c0_18] : memref<1x8x8xf32, #tpu.memory_space<vmem>>, vector<1x8x8xf32>
    %22 = vector.shape_cast %21 : vector<1x8x8xf32> to vector<8x8xf32>
    %23 = vector.shape_cast %20 : vector<8x8xf32> to vector<1x8x8xf32>
    tpu.vector_store %arg5[%c0_16, %c0_17, %c0_18], %23 {strides = array<i32>} : memref<1x8x8xf32, #tpu.memory_space<vmem>>, vector<1x8x8xf32>,
    return
  }
  func.func @transform_0(%arg0: i32) -> (i32, i32, i32) {
    %c0_i32 = arith.constant 0 : i32
    %c0_i32_0 = arith.constant 0 : i32
    %c0_i32_1 = arith.constant 0 : i32
    return %arg0, %c0_i32, %c0_i32_0 : i32, i32, i32
  }
  func.func @transform_1(%arg0: i32) -> (i32, i32, i32) {
    %c0_i32 = arith.constant 0 : i32
    %c0_i32_0 = arith.constant 0 : i32
    %c0_i32_1 = arith.constant 0 : i32
    return %arg0, %c0_i32, %c0_i32_0 : i32, i32, i32
  }
  func.func @transform_2(%arg0: i32) -> (i32, i32, i32) {
    %c0_i32 = arith.constant 0 : i32
    %c0_i32_0 = arith.constant 0 : i32
    %c0_i32_1 = arith.constant 0 : i32
    %c0_i32_2 = arith.constant 0 : i32
    return %c0_i32, %c0_i32_0, %c0_i32_1 : i32, i32, i32
  }
  func.func @transform_3(%arg0: i32) -> (i32, i32) {
    %c0_i32 = arith.constant 0 : i32
    %c0_i32_0 = arith.constant 0 : i32
    %c0_i32_1 = arith.constant 0 : i32
    return %c0_i32, %c0_i32_0 : i32, i32
  }
  func.func @transform_4(%arg0: i32) -> (i32, i32, i32) {
    %c0_i32 = arith.constant 0 : i32
    %c0_i32_0 = arith.constant 0 : i32
    %c0_i32_1 = arith.constant 0 : i32
    return %arg0, %c0_i32, %c0_i32_0 : i32, i32, i32
  }
}

</mosaic_0001>

<bundles_post_ra>
// kernel: tpu_custom_call.1
= control target key start
LH: loop header
LB: loop body
LE: loop exit
PB: predicated region body
PF: predicated region fallthrough
CT: control target
= control target key end

     0   :  { %s938_s0 = inlined_call_operand.hbm [shape: f32[2,8,9], index: 0, kind: input, shape index: {}]   ;;  %s939_s1 = inlined_call_operand.hbm [shape: f32[2,8,9], index: 1, kind: input, shape index: {}]   ;;  %s940_s2 = inlined_call_operand.hbm [shape: f32[3,8,8], index: 2, kind: input, shape index: {}]   ;;  %s941_s3 = inlined_call_operand.vmem [shape: f32[8,1], index: 3, kind: input, shape index: {}]   ;;  %s942_s4 = inlined_call_operand.hbm [shape: f32[2,8,8], index: 4, kind: output, shape index: {}]  }
   0x1   :  { %944 = sst [smem:[#allocation15_spill]] %s940_s2 }
   0x2   :  { %9 = vsyncpa [#allocation3], 0 }
   0x3   :  { %11 = vsyncpa [#allocation3 + $0x1], 0 }
   0x4   :  { %12 = vsyncpa [#allocation6], 0 }
   0x5   :  { %14 = vsyncpa [#allocation6 + $0x1], 0 }
   0x6   :  { %15 = vsyncpa [#allocation4], 0 }
   0x7   :  { %17 = vsyncpa [#allocation4 + $0x1], 0  ;;  %s761_s15 = smov 0   ;;  %s763_s16 = smov 0  }
   0x8   :  { %s765_s17 = smov 0   ;;  %s767_s18 = smov 0  }
   0x9 LB: > { %945 = sst [smem:[#allocation13_spill]] %s725_s17  ;;  %s785_s22 = sadd.s32 4294967295, %s729_s18   ;;  %s729_s18 = sphi %s767_s18, %s959_s18   ;;  %s725_s17 = sphi %s765_s17, %s956_s17   ;;  %s721_s16 = sphi %s763_s16, %s958_s16   ;;  %s717_s15 = sphi %s761_s15, %s957_s15  }
   0xa   : > { %s946_s2 = sld [smem:[#allocation15_spill]]  ;;  %p479_p0 = scmp.ge.s32.totalorder %s729_s18, 1 }
   0xb   : > { %p44_p1 = scmp.eq.s32.totalorder %s785_s22, 0  ;;  %p148_p2 = scmp.lt.s32.totalorder %s729_s18, 3 }
   0xc   : > { %s731_s24 = smov [#allocation7]   ;;  %s732_s26 = smov 128  }
   0xd   : > { %p790_p3 = pnand %p479_p0, %p148_p2  ;;  %s161_s25 = sshll.u32 %s731_s24, 4  ;;  %s162_s25 = int_to_ptr.vmem [resolvable:$true] %s161_s25 }
   0xe   : > { %s733_s27 = smov 8   ;;  %s478_s28 = sadd.s32 4294967294, %s729_s18  }
   0xf   : > { %p508_p4 = pneg %p790_p3  ;;  %s801_s29 = sadd.s32 1, %s729_s18  }
  0x10   : > { %s159_s21 = sshll.u32 %s946_s2, 4  ;;  %s30_s30 = sadd.s32 1, %s725_s17  ;;  %s160_s21 = int_to_ptr.hbm [resolvable:$true] %s159_s21 }
  0x11   : > { %p509_p6 = pnand %p508_p4, %p44_p1  ;;  %s27_s5 = ssub.s32 %s729_s18, %s801_s29 }
  0x12   : > { %p37_p7 = scmp.ne.s32.totalorder %s725_s17, %s721_s16  ;;  %p28_p8 = scmp.eq.s32.totalorder %s27_s5, 0 }
  0x13   : > { %511 = dma.hbm_to_vmem [thread:$0]  (!%p509_p6), %s160_s21, 384, %s162_s25, [#allocation6], %s732_s26, %s732_s26, %s733_s27  }
  0x14   : > { %p38_p9 = scmp.eq.s32.totalorder %s729_s18, 0  ;;  %p43_p10 = scmp.ne.s32.totalorder %s721_s16, %s717_s15 }
  0x15   : > { %p135_p11 = scmp.eq.s32.totalorder %s785_s22, 1  ;;  %p141_p2 = scmp.eq.s32.totalorder %s478_s28, 1 }
  0x16   : > { %s813_s6 = scalar_select %p28_p8, %s725_s17, %s30_s30  }
  0x17   : > { %p815_p12 = por %p38_p9, %p37_p7  ;;  %p821_p13 = por %p44_p1, %p43_p10 }
  0x18   : > { %948 = sst [smem:[#allocation14_spill]] %s813_s6  ;;  %p825_p0 = por %p135_p11, %p37_p7 }
  0x19   : > { %p524_p4 = scmp.lt.s32.totalorder %s729_s18, 2  ;;  %s178_s10 = sand.u32 1, %s725_s17  }
  0x1a   : > { %p831_p6 = por %p141_p2, %p43_p10  ;;  %s482_s12 = sshll.u32 %s178_s10, 3 }
  0x1b   : > { %s483_s13 = sshll.u32 %s729_s18, 3  ;;  %s182_s24 = scalar_lea.vmem [#allocation2], %s482_s12 }
  0x1c   : > { %s186_s20 = scalar_lea.hbm %s938_s0, %s483_s13  ;;  %s190_s25 = sshll.u32 %s182_s24, 4  ;;  %s191_s25 = int_to_ptr.vmem [resolvable:$true] %s190_s25 }
  0x1d   : > { %s188_s21 = sshll.u32 %s186_s20, 4  ;;  %p841_p7 = pnand %p524_p4, %p815_p12  ;;  %s189_s21 = int_to_ptr.hbm [resolvable:$true] %s188_s21 }
  0x1e   : > { %s205_s30 = scalar_lea.hbm %s939_s1, %s483_s13  ;;  %s197_s5 = sand.u32 1, %s729_s18  }
  0x1f   : > { %s179_s2 = scalar_lea.sflag [#allocation3], %s178_s10  ;;  %s595_s14 = sshra.s32 %s189_s21, 4  ;;  %s596_s14 = int_to_ptr.hbm [resolvable:$true] %s595_s14 }
  0x20   : > { %s597_s19 = scalar_lea.hbm %s596_s14, 8  ;;  %p599_p9 = pneg %p841_p7 }
  0x21   : > { %p598_p8 = scmp.ne.s32.totalorder %s596_s14, %s597_s19  ;;  %s602_s24 = scalar_lea.hbm %s938_s0, 16 }
  0x22   : > { %p603_p12 = scmp.lt.s32.totalorder %s596_s14, %s938_s0  ;;  %p604_p2 = scmp.lt.s32.totalorder %s602_s24, %s597_s19 }
  0x23   : > { %p600_p10 = pnand %p599_p9, %p598_p8 }
  0x24   : > { %p605_p4 = por %p604_p2, %p603_p12 }
  0x25   : > { %p601_p11 = pneg %p600_p10 }
  0x27   : > { %p606_p5 = pnand %p605_p4, %p601_p11 }
  0x29   : > { %609 = shalt.err (!%p606_p5)
}
  0x2a   : > { %515 = dma.hbm_to_vmem [thread:$0]  (!%p841_p7), %s189_s21, 128, %s191_s25, %s179_s2  }
  0x2b   : > { %s207_s10 = sshll.u32 %s205_s30, 4  ;;  %s201_s13 = scalar_lea.vmem [#allocation5], %s482_s12  ;;  %s208_s10 = int_to_ptr.hbm [resolvable:$true] %s207_s10 }
  0x2c   : > { %s209_s6 = sshll.u32 %s201_s13, 4  ;;  %s198_s17 = scalar_lea.sflag [#allocation6], %s197_s5  ;;  %s210_s6 = int_to_ptr.vmem [resolvable:$true] %s209_s6 }
  0x2d   : > { %s625_s7 = sshra.s32 %s208_s10, 4  ;;  %s632_s24 = scalar_lea.hbm %s939_s1, 16  ;;  %s626_s7 = int_to_ptr.hbm [resolvable:$true] %s625_s7 }
  0x2e   : > { %s627_s20 = scalar_lea.hbm %s626_s7, 8  ;;  %p633_p5 = scmp.lt.s32.totalorder %s626_s7, %s939_s1 }
  0x2f   : > { %p628_p8 = scmp.ne.s32.totalorder %s626_s7, %s627_s20  ;;  %p634_p11 = scmp.lt.s32.totalorder %s632_s24, %s627_s20 }
  0x31   : > { %p630_p10 = pnand %p628_p8, %p599_p9  ;;  %p635_p2 = por %p634_p11, %p633_p5 }
  0x33   : > { %p631_p12 = pneg %p630_p10 }
  0x35   : > { %p636_p4 = pnand %p635_p2, %p631_p12 }
  0x37   : > { %639 = shalt.err (!%p636_p4)
}
  0x38   : > { %518 = dma.hbm_to_vmem [thread:$0]  (!%p841_p7), %s208_s10, 128, %s210_s6, %s198_s17  }
  0x39   : > { %218 = sbr.rel (%p790_p3) target bundleno = 324 (0x144), region = 36  ;;  %s876_s12 = sand.u32 (!%p790_p3), 1, %s721_s16  }
  0x3a   : > { %s879_s21 = sshll.u32 (!%p790_p3), %s876_s12, 3  ;;  %s221_s25 = scalar_lea.sflag (!%p790_p3), [#allocation3], %s876_s12 }
  0x3b   : > { %s224_s30 = scalar_lea.vmem (!%p790_p3), [#allocation2], %s879_s21 }
  0x3e   : > { %700 = dma.done.wait (%p821_p13), %s221_s25, 128  }
  0x3f   : > { %702 = vsyncadd (%p821_p13), %s221_s25, 4294967168  ;;  %s230_s17 = sand.u32 1, %s785_s22   ;;  %s234_s6 = scalar_lea.vmem [#allocation5], %s879_s21 }
  0x40   : > { %s231_s23 = scalar_lea.sflag [#allocation6], %s230_s17 }
  0x41   : > { %704 = dma.done.wait (%p821_p13), %s231_s23, 128  }
  0x42   : > { %706 = vsyncadd (%p821_p13), %s231_s23, 4294967168 }
  0x43   : > { %708 = dma.done.wait (%p44_p1), [#allocation6], 384  }
  0x44   : > { %710 = vsyncadd (%p44_p1), [#allocation6], 4294966912  ;;  %v270_v0 = vld [vmem:[%s224_s30] sm:$0xff]  ;;  %s734_s26 = smov 127   ;;  %vm275_vm0 = vcmask 64512   ;;  %v271_v1 = vld [vmem:[%s234_s6] sm:$0xff] }
  0x45   : > { %325 = vrot.lane.b32.xlu0 %v270_v0, %s734_s26  ;;  %317 = vmatpush.msra.mxu1 %v270_v0  ;;  %v274_v2 = vld [vmem:[#allocation7 + $0x8] sm:$0xff]  ;;  %v272_v3 = vld [vmem:[#allocation7] sm:$0xff]  ;;  %v735_v5 = vmov 0   ;;  %v323_v6 = vld [vmem:[#allocation7 + $0x10] sm:$0xff]  ;;  %s495_s28 = sshll.u32 %s785_s22, 3  ;;  %s269_s20 = scalar_lea.vmem [#allocation8], %s879_s21 }
  0x46   : > { %294 = vmatpush.msra.mxu0 %v271_v1  ;;  %492 = vmatmul.msk.f32.vlgmr.msra.gmra.mxu1 %vm275_vm0, %v272_v3  ;;  %v352_v4 = vld [vmem:[%s941_s3] sm:$0xff]  ;;  %s371_s7 = scalar_lea.hbm %s942_s4, %s495_s28  ;;  %s373_s14 = sshll.u32 %s269_s20, 4  ;;  %s374_s14 = int_to_ptr.vmem [resolvable:$true] %s373_s14 }
  0x47   : > { %491 = vmatmul.msk.f32.vlgmr.msra.gmra.mxu0 %vm275_vm0, %v274_v2  ;;  %564 = vset.pattern.permute.xlu0 %v735_v5  ;;  %s375_s19 = sshll.u32 %s371_s7, 4  ;;  %s361_s24 = scalar_lea.sflag [#allocation4], %s876_s12  ;;  %s376_s19 = int_to_ptr.hbm [resolvable:$true] %s375_s19 }
  0x48   : > { %s669_s27 = sshra.s32 %s376_s19, 4  ;;  %s675_s21 = scalar_lea.hbm %s942_s4, 16  ;;  %s670_s27 = int_to_ptr.hbm [resolvable:$true] %s669_s27 }
  0x49   : > { %s671_s22 = scalar_lea.hbm %s670_s27, 8  ;;  %p676_p7 = scmp.lt.s32.totalorder %s670_s27, %s942_s4 }
  0x4a   : > { %p672_p1 = scmp.ne.s32.totalorder %s670_s27, %s671_s22  ;;  %p677_p9 = scmp.lt.s32.totalorder %s675_s21, %s671_s22 }
  0x4c   : > { %p673_p3 = pnand %p672_p1, %p825_p0  ;;  %p678_p8 = por %p677_p9, %p676_p7 }
  0x4d   : > { %355 = vperm.xlu0 %564, %v352_v4  }
  0x4e   : > { %p674_p13 = pneg %p673_p3 }
  0x50   : > { %p679_p10 = pnand %p678_p8, %p674_p13 }
  0xb7   : > { %v326_v7 = vpop.permute.xlu0 %325 }
  0xb8   : > { %346 = vmatpush.msra.mxu2 %v326_v7 }
  0xb9   : > { %493 = vmatmul.msk.f32.vlgmr.msra.gmra.mxu2 %vm275_vm0, %v323_v6 }
  0xbf   : > { %v356_v12 = vpop.permute.xlu0 %355 }
  0xc3   : > { %v319_v9 = vpop.f32.mrf.mxu1 }
  0xc4   : > { %v296_v8 = vpop.f32.mrf.mxu0 }
  0xc5   : > { %v320_v10 = vadd.f32 %v319_v9, %v296_v8 }
 0x13c   : > { %v348_v11 = vpop.f32.mrf.mxu2 }
 0x13d   : > { %v351_v13 = vadd.f32 %v348_v11, %v320_v10 }
 0x13f   : > { %v358_v14 = vadd.f32 %v356_v12, %v351_v13 }
 0x141   : > { %359 = vst.msk [vmem:[%s269_s20] sm:$0xff] %vm275_vm0, %v358_v14 }
 0x142   : > { %682 = shalt.err (!%p679_p10)
}
 0x143   : > { %506 = dma.vmem_to_hbm [thread:$0]  (%p825_p0), %s374_s14, 128, %s376_s19, %s361_s24  }
 0x144 PF: > { %s387_s12 = sand.u32 1, %s717_s15   ;;  %p954_p12 = scmp.ge.s32.totalorder %s729_s18, 2 }
 0x145   : > { %s388_s23 = scalar_lea.sflag [#allocation4], %s387_s12 }
 0x146   : > { %p520_p5 = pnand %p954_p12, %p831_p6 }
 0x148   : > { %p521_p11 = pneg %p520_p5 }
 0x14a   : > { %712 = dma.done.wait (%p521_p11), %s388_s23, 128  }
 0x14b   : > { %714 = vsyncadd (%p521_p11), %s388_s23, 4294967168  ;;  %s955_s6 = sld [smem:[#allocation13_spill]]  ;;  %p20_p2 = scmp.ge.s32.totalorder %s801_s29, 4  }
 0x14c   : > { %s956_s17 = sld [smem:[#allocation14_spill]]  ;;  %s957_s15 = smov %s721_s16 }
 0x14d   : > { %s959_s18 = smov %s801_s29  ;;  %22 = sbr.rel (!%p20_p2) target bundleno = 9 (0x9), region = 100 }
 0x151   : > { %s958_s16 = smov %s955_s6 }
 0x152   :  { %394 = vsyncpa [#allocation3], 1 }
 0x153   :  { %396 = vsyncpa [#allocation3 + $0x1], 1 }
 0x154   :  { %397 = vsyncpa [#allocation6], 1 }
 0x155   :  { %399 = vsyncpa [#allocation6 + $0x1], 1 }
 0x156   :  { %400 = vsyncpa [#allocation4], 1 }
 0x157   :  { %402 = vsyncpa [#allocation4 + $0x1], 1 }

</bundles_post_ra>
